<compile_context>
chip_gen: v5e
topology: v5e:2x2
jax: 0.10.0
libtpu: 0.0.40
codegen_flags: <defaults>
</compile_context>

<pallas_src>
import math

import numpy as np

import jax
import jax.numpy as jnp
from jax import lax
from jax.experimental import pallas as pl
from jax.experimental.pallas import tpu as pltpu

LANES = 128
SUBLANES = 8
BN_EPS = 1e-5


# ----------------------------------------------------------------------------
# Fused kernel: num_stages x (conv3 replicate-pad + BN(train) + ReLU), dense
# channel "concatenation" kept as an add into a single 128-lane VMEM slab.
# ----------------------------------------------------------------------------
def _make_fused_kernel(num_stages, nl, l, indim, outdim):
    """kernel(x_ref, w_ref, g_ref, b_ref, pos_ref, o_ref, slab_ref).

    x_ref   : (nl, indim)  f32   unpadded input tokens (nl = N*L, channels-last)
    w_ref   : (num_stages, 3, 128, 128) bf16  per-stage per-tap packed weights
    g_ref   : (num_stages, 128) f32  BN gamma, zero-padded outside real lanes
    b_ref   : (num_stages, 128) f32  BN beta,  zero-padded outside real lanes
    pos_ref : (nl, 1) int32   position within each length-l sequence
    o_ref   : (nl, outdim) f32  outconv result
    slab_ref: (nl, 128) f32  VMEM scratch holding the packed activation slab
    """

    def kernel(x_ref, w_ref, g_ref, b_ref, pos_ref, o_ref, slab_ref):
        # --- build the packed activation slab: input channels -> lanes [0:indim]
        slab_ref[...] = jnp.zeros_like(slab_ref)
        slab_ref[:, 0:indim] = x_ref[...]
        slab = slab_ref[...]                               # (nl, 128) f32

        # --- hoisted per-token sequence-edge masks (computed once, reused) ----
        pos = pos_ref[...]                                 # (nl, 1) int32
        is_first = pos == 0                                # first element of its seq
        is_last = pos == (l - 1)                           # last element of its seq

        g_all = g_ref[...]                                 # (num_stages, 128) f32
        b_all = b_ref[...]
        halo = jnp.zeros((SUBLANES, LANES), jnp.float32)   # constant, hoisted
        inv_cnt = 1.0 / float(nl)

        for s in range(num_stages):                        # static unroll
            # --- replicate-padded temporal neighbours, built in VMEM ---------
            # zero halo keeps the concat sublane-aligned; halo rows are only
            # read at masked (sequence-edge) positions.
            ext = jnp.concatenate([halo, slab, halo], axis=0)      # (nl+16, 128)
            prev = jnp.where(is_first, slab,
                             ext[SUBLANES - 1:SUBLANES - 1 + nl, :])  # x[max(i-1,0)]
            nxt = jnp.where(is_last, slab,
                            ext[SUBLANES + 1:SUBLANES + 1 + nl, :])   # x[min(i+1,l-1)]

            # --- conv as three per-tap MXU matmuls (bf16 in, f32 accumulate) --
            acc = jnp.dot(prev.astype(jnp.bfloat16), w_ref[s, 0, :, :],
                          preferred_element_type=jnp.float32)
            acc = acc + jnp.dot(slab.astype(jnp.bfloat16), w_ref[s, 1, :, :],
                                preferred_element_type=jnp.float32)
            acc = acc + jnp.dot(nxt.astype(jnp.bfloat16), w_ref[s, 2, :, :],
                                preferred_element_type=jnp.float32)   # (nl, 128)

            # --- BatchNorm1d training-mode stats (biased var), clamped -------
            mean = jnp.sum(acc, axis=0, keepdims=True) * inv_cnt
            var = jnp.sum(acc * acc, axis=0, keepdims=True) * inv_cnt - mean * mean
            var = jnp.maximum(var, 0.0)
            y = (acc - mean) * lax.rsqrt(var + BN_EPS)
            y = y * g_all[s:s + 1, :] + b_all[s:s + 1, :]
            y = jnp.maximum(y, 0.0)                        # ReLU

            if s < num_stages - 1:
                # DenseNet concat == add: y is exactly zero outside this
                # stage's output lanes (weight cols / gamma / beta are zero).
                slab = slab + y
            else:
                o_ref[...] = y[:, 0:outdim]                # unpadded output store

    return kernel


# ----------------------------------------------------------------------------
# Parameter packing (done ONCE at setup, not inside the jitted forward)
# ----------------------------------------------------------------------------
def pack_params(params, indim, middle_dim, outdim, num_convs):
    """PyTorch Conv1d (Cout, Cin, 3) weights + BN affine -> single-slab layout.

    Slab lane map: [0:indim] input, [indim + s*middle : +middle] stage-s output.
    Weight row c of stage s == slab lane c (inputs of stage s are exactly slab
    lanes [0 : indim + s*middle] in concat order); weight columns are placed at
    that stage's output lane offset; everything else is zero.
    """
    num_stages = num_convs + 1
    total_c = indim + num_convs * middle_dim
    if total_c > LANES or outdim > LANES:
        raise NotImplementedError(
            "multi-128-lane-group fallback not implemented (channels > 128)")

    w_packed = jnp.zeros((num_stages, 3, LANES, LANES), jnp.float32)
    gamma = jnp.zeros((num_stages, LANES), jnp.float32)
    beta = jnp.zeros((num_stages, LANES), jnp.float32)
    for s in range(num_stages):
        w, g, b = params["convs"][s] if s < num_convs else params["out"]
        cout, cin, _k = w.shape
        expected_cin = indim + (s if s < num_convs else num_convs) * middle_dim
        assert cin == expected_cin, (cin, expected_cin)
        off = indim + s * middle_dim if s < num_convs else 0
        wt = jnp.transpose(w.astype(jnp.float32), (2, 1, 0))       # (3, cin, cout)
        w_packed = w_packed.at[s, :, :cin, off:off + cout].set(wt)
        gamma = gamma.at[s, off:off + cout].set(g.astype(jnp.float32))
        beta = beta.at[s, off:off + cout].set(b.astype(jnp.float32))
    return w_packed.astype(jnp.bfloat16), gamma, beta


# ----------------------------------------------------------------------------
# TemporalDenseConvLayer1 forward (factory closes over the packed parameters)
# ----------------------------------------------------------------------------
def make_temporal_dense_conv_layer1(params, indim, outdim, middle_dim, num_convs=2):
    w_packed, gamma, beta = pack_params(params, indim, middle_dim, outdim, num_convs)
    num_stages = num_convs + 1

    @jax.jit
    def forward(x_ncl):
        """x_ncl: (N, indim, L) PyTorch NCL layout -> (N, outdim, L)."""
        n, c, l = x_ncl.shape
        assert c == indim
        nl = n * l
        # Token count must be a sublane multiple so the halo concat / slices
        # stay tile-aligned (pad L upstream otherwise).
        assert nl % SUBLANES == 0, "N*L must be a multiple of 8"

        # NCL -> token-major (N*L, indim); NO 128-lane padding over HBM.
        x_tok = jnp.transpose(x_ncl, (0, 2, 1)).reshape(nl, indim).astype(jnp.float32)
        pos = (jnp.arange(nl, dtype=jnp.int32) % l).reshape(nl, 1)

        out = pl.pallas_call(
            _make_fused_kernel(num_stages, nl, l, indim, outdim),
            out_shape=jax.ShapeDtypeStruct((nl, outdim), jnp.float32),
            grid=(1,),
            in_specs=[
                pl.BlockSpec((nl, indim), lambda i: (0, 0)),
                pl.BlockSpec((num_stages, 3, LANES, LANES), lambda i: (0, 0, 0, 0)),
                pl.BlockSpec((num_stages, LANES), lambda i: (0, 0)),
                pl.BlockSpec((num_stages, LANES), lambda i: (0, 0)),
                pl.BlockSpec((nl, 1), lambda i: (0, 0)),
            ],
            out_specs=pl.BlockSpec((nl, outdim), lambda i: (0, 0)),
            scratch_shapes=[pltpu.VMEM((nl, LANES), jnp.float32)],
            compiler_params=pltpu.CompilerParams(
                dimension_semantics=("arbitrary",),
                # Tiny footprint here; re-derive per generation (v7x: 64 MiB
                # physical) once the token axis is tiled for production N*L.
                vmem_limit_bytes=32 * 1024 * 1024),
        )(x_tok, w_packed, gamma, beta, pos)

        return jnp.transpose(out.reshape(n, l, outdim), (0, 2, 1))   # back to NCL

    return forward


# ----------------------------------------------------------------------------
# Pure-JAX reference (mirrors the kernel's bf16 matmul inputs / f32 accumulation)
# ----------------------------------------------------------------------------
def reference_forward(x_ncl, params):
    def conv_bn_relu(x, w, g, b):
        l = x.shape[-1]
        xp = jnp.pad(x, ((0, 0), (0, 0), (1, 1)), mode="edge")      # replicate pad
        win = jnp.stack([xp[:, :, k:k + l] for k in range(3)], axis=-1)  # (n,c,l,3)
        y = jnp.einsum("nclk,ock->nol",
                       win.astype(jnp.bfloat16), w.astype(jnp.bfloat16),
                       preferred_element_type=jnp.float32)
        mean = jnp.mean(y, axis=(0, 2), keepdims=True)
        var = jnp.mean(jnp.square(y - mean), axis=(0, 2), keepdims=True)
        y = (y - mean) / jnp.sqrt(var + BN_EPS)
        y = y * g.reshape(1, -1, 1) + b.reshape(1, -1, 1)
        return jnp.maximum(y, 0.0)

    x = x_ncl.astype(jnp.float32)
    for (w, g, b) in params["convs"]:
        x = jnp.concatenate([x, conv_bn_relu(x, w, g, b)], axis=1)
    w, g, b = params["out"]
    return conv_bn_relu(x, w, g, b)


# ----------------------------------------------------------------------------
# Deterministic synthetic parameters matching the torch module's shapes
# ----------------------------------------------------------------------------
def init_params(key, indim, outdim, middle_dim, num_convs=2):
    params = {"convs": [], "out": None}
    for i in range(num_convs):
        cin = indim + i * middle_dim
        key, wk = jax.random.split(key)
        w = jax.random.normal(wk, (middle_dim, cin, 3), jnp.float32)
        w = w * (1.0 / math.sqrt(cin * 3))
        params["convs"].append(
            (w, jnp.ones((middle_dim,), jnp.float32),
             jnp.zeros((middle_dim,), jnp.float32)))
    cin = indim + num_convs * middle_dim
    key, wk = jax.random.split(key)
    w = jax.random.normal(wk, (outdim, cin, 3), jnp.float32)
    w = w * (1.0 / math.sqrt(cin * 3))
    params["out"] = (w, jnp.ones((outdim,), jnp.float32),
                     jnp.zeros((outdim,), jnp.float32))
    return params


if __name__ == "__main__":
    key = jax.random.PRNGKey(0)
    N, INDIM, L = 2, 4, 16
    MIDDLE, OUTDIM, NUM_CONVS = 8, 8, 2

    key, xk = jax.random.split(key)
    x = jax.random.normal(xk, (N, INDIM, L), jnp.float32)
    params = init_params(key, INDIM, OUTDIM, MIDDLE, NUM_CONVS)

    forward = make_temporal_dense_conv_layer1(params, INDIM, OUTDIM, MIDDLE, NUM_CONVS)
    y = forward(x)
    jax.block_until_ready(y)
    assert y.shape == (N, OUTDIM, L), y.shape

    # Correctness check against a pure-JAX reference (tolerance sized for the
    # bf16 matmul inputs used on the MXU; structural bugs give O(1) errors).
    y_ref = jax.jit(lambda v: reference_forward(v, params))(x)
    np.testing.assert_allclose(np.asarray(y), np.asarray(y_ref),
                               rtol=5e-2, atol=5e-2)
    print("KERNEL_OK")
</pallas_src>

<mosaic_0001>
module attributes {stable_mosaic.version = 11 : i64} {
  func.func @kernel(%arg0: i32, %arg1: memref<32x4xf32, #tpu.memory_space<vmem>>, %arg2: memref<3x3x128x128xbf16, #tpu.memory_space<vmem>>, %arg3: memref<3x128xf32, #tpu.memory_space<vmem>>, %arg4: memref<3x128xf32, #tpu.memory_space<vmem>>, %arg5: memref<32x1xi32, #tpu.memory_space<vmem>>, %arg6: memref<32x8xf32, #tpu.memory_space<vmem>>, %arg7: memref<32x128xf32, #tpu.memory_space<vmem>>) attributes {dimension_semantics = [#tpu.dimension_semantics<arbitrary>], iteration_bounds = array<i64: 1>, scalar_prefetch = 0 : i64, scratch_operands = 1 : i64, tpu.core_type = #tpu.core_type<tc>, window_params = [{pipeline_mode = #tpu.pipeline_mode<synchronous>, transform_indices = @transform_0, window_bounds = array<i64: 32, 4>}, {pipeline_mode = #tpu.pipeline_mode<synchronous>, transform_indices = @transform_1, window_bounds = array<i64: 3, 3, 128, 128>}, {pipeline_mode = #tpu.pipeline_mode<synchronous>, transform_indices = @transform_2, window_bounds = array<i64: 3, 128>}, {pipeline_mode = #tpu.pipeline_mode<synchronous>, transform_indices = @transform_3, window_bounds = array<i64: 3, 128>}, {pipeline_mode = #tpu.pipeline_mode<synchronous>, transform_indices = @transform_4, window_bounds = array<i64: 32, 1>}, {pipeline_mode = #tpu.pipeline_mode<synchronous>, transform_indices = @transform_5, window_bounds = array<i64: 32, 8>}]} {
    %cst = arith.constant 0.000000e+00 : f32
    %0 = vector.broadcast %cst : f32 to vector<32x128xf32>
    %c0 = arith.constant 0 : index
    %c0_0 = arith.constant 0 : index
    %1 = vector.load %arg7[%c0, %c0_0] : memref<32x128xf32, #tpu.memory_space<vmem>>, vector<32x128xf32>
    tpu.vector_store %arg7[%c0, %c0_0], %0 {strides = array<i32>} : memref<32x128xf32, #tpu.memory_space<vmem>>, vector<32x128xf32>,
    %c0_1 = arith.constant 0 : index
    %c0_2 = arith.constant 0 : index
    %2 = vector.load %arg1[%c0_1, %c0_2] : memref<32x4xf32, #tpu.memory_space<vmem>>, vector<32x4xf32>
    %c0_3 = arith.constant 0 : index
    %c0_4 = arith.constant 0 : index
    %3 = vector.load %arg7[%c0_3, %c0_4] : memref<32x128xf32, #tpu.memory_space<vmem>>, vector<32x4xf32>
    tpu.vector_store %arg7[%c0_3, %c0_4], %2 {strides = array<i32>} : memref<32x128xf32, #tpu.memory_space<vmem>>, vector<32x4xf32>,
    %c0_5 = arith.constant 0 : index
    %c0_6 = arith.constant 0 : index
    %4 = vector.load %arg7[%c0_5, %c0_6] : memref<32x128xf32, #tpu.memory_space<vmem>>, vector<32x128xf32>
    %c0_7 = arith.constant 0 : index
    %c0_8 = arith.constant 0 : index
    %5 = vector.load %arg5[%c0_7, %c0_8] : memref<32x1xi32, #tpu.memory_space<vmem>>, vector<32x1xi32>
    %c0_i32 = arith.constant 0 : i32
    %6 = vector.broadcast %c0_i32 : i32 to vector<32x1xi32>
    %7 = arith.cmpi eq, %5, %6 : vector<32x1xi32>
    %c15_i32 = arith.constant 15 : i32
    %8 = vector.broadcast %c15_i32 : i32 to vector<32x1xi32>
    %9 = arith.cmpi eq, %5, %8 : vector<32x1xi32>
    %c0_9 = arith.constant 0 : index
    %c0_10 = arith.constant 0 : index
    %10 = vector.load %arg3[%c0_9, %c0_10] : memref<3x128xf32, #tpu.memory_space<vmem>>, vector<3x128xf32>
    %c0_11 = arith.constant 0 : index
    %c0_12 = arith.constant 0 : index
    %11 = vector.load %arg4[%c0_11, %c0_12] : memref<3x128xf32, #tpu.memory_space<vmem>>, vector<3x128xf32>
    %cst_13 = arith.constant 0.000000e+00 : f32
    %12 = vector.broadcast %cst_13 : f32 to vector<8x128xf32>
    %13 = tpu.concatenate %12, %4, %12 in 0 : vector<8x128xf32>, vector<32x128xf32>, vector<8x128xf32> -> vector<48x128xf32>
    %14 = vector.extract_strided_slice %13 {offsets = [7, 0], sizes = [32, 128], strides = [1, 1]} : vector<48x128xf32> to vector<32x128xf32>
    %15 = vector.shape_cast %7 : vector<32x1xi1> to vector<32x1xi1>
    %16 = vector.broadcast %15 : vector<32x1xi1> to vector<32x128xi1>
    %17 = arith.select %16, %4, %14 : vector<32x128xi1>, vector<32x128xf32>
    %18 = vector.extract_strided_slice %13 {offsets = [9, 0], sizes = [32, 128], strides = [1, 1]} : vector<48x128xf32> to vector<32x128xf32>
    %19 = vector.shape_cast %9 : vector<32x1xi1> to vector<32x1xi1>
    %20 = vector.broadcast %19 : vector<32x1xi1> to vector<32x128xi1>
    %21 = arith.select %20, %4, %18 : vector<32x128xi1>, vector<32x128xf32>
    %22 = arith.truncf %17 : vector<32x128xf32> to vector<32x128xbf16>
    %c0_14 = arith.constant 0 : index
    %c0_15 = arith.constant 0 : index
    %c0_16 = arith.constant 0 : index
    %c0_17 = arith.constant 0 : index
    %23 = vector.load %arg2[%c0_14, %c0_15, %c0_16, %c0_17] : memref<3x3x128x128xbf16, #tpu.memory_space<vmem>>, vector<1x1x128x128xbf16>
    %24 = vector.shape_cast %23 : vector<1x1x128x128xbf16> to vector<128x128xbf16>
    %cst_18 = arith.constant dense<0.000000e+00> : vector<32x128xf32>
    %25 = tpu.matmul %22, %24, %cst_18 {dimension_numbers = #tpu.dot_dimension_numbers<[1], [0], [0], [1], [0, 0, 1, 1], [], []>} : vector<32x128xbf16>, vector<128x128xbf16>, vector<32x128xf32> -> vector<32x128xf32>
    %26 = arith.truncf %4 : vector<32x128xf32> to vector<32x128xbf16>
    %c0_19 = arith.constant 0 : index
    %c1 = arith.constant 1 : index
    %c0_20 = arith.constant 0 : index
    %c0_21 = arith.constant 0 : index
    %27 = vector.load %arg2[%c0_19, %c1, %c0_20, %c0_21] : memref<3x3x128x128xbf16, #tpu.memory_space<vmem>>, vector<1x1x128x128xbf16>
    %28 = vector.shape_cast %27 : vector<1x1x128x128xbf16> to vector<128x128xbf16>
    %cst_22 = arith.constant dense<0.000000e+00> : vector<32x128xf32>
    %29 = tpu.matmul %26, %28, %cst_22 {dimension_numbers = #tpu.dot_dimension_numbers<[1], [0], [0], [1], [0, 0, 1, 1], [], []>} : vector<32x128xbf16>, vector<128x128xbf16>, vector<32x128xf32> -> vector<32x128xf32>
    %30 = arith.addf %25, %29 : vector<32x128xf32>
    %31 = arith.truncf %21 : vector<32x128xf32> to vector<32x128xbf16>
    %c0_23 = arith.constant 0 : index
    %c2 = arith.constant 2 : index
    %c0_24 = arith.constant 0 : index
    %c0_25 = arith.constant 0 : index
    %32 = vector.load %arg2[%c0_23, %c2, %c0_24, %c0_25] : memref<3x3x128x128xbf16, #tpu.memory_space<vmem>>, vector<1x1x128x128xbf16>
    %33 = vector.shape_cast %32 : vector<1x1x128x128xbf16> to vector<128x128xbf16>
    %cst_26 = arith.constant dense<0.000000e+00> : vector<32x128xf32>
    %34 = tpu.matmul %31, %33, %cst_26 {dimension_numbers = #tpu.dot_dimension_numbers<[1], [0], [0], [1], [0, 0, 1, 1], [], []>} : vector<32x128xbf16>, vector<128x128xbf16>, vector<32x128xf32> -> vector<32x128xf32>
    %35 = arith.addf %30, %34 : vector<32x128xf32>
    %cst_27 = arith.constant dense<0.000000e+00> : vector<128xf32>
    %36 = vector.multi_reduction <add>, %35, %cst_27 [0] : vector<32x128xf32> to vector<128xf32>
    %37 = vector.shape_cast %36 : vector<128xf32> to vector<1x128xf32>
    %cst_28 = arith.constant 3.125000e-02 : f32
    %38 = vector.broadcast %cst_28 : f32 to vector<1x128xf32>
    %39 = arith.mulf %37, %38 : vector<1x128xf32>
    %40 = arith.mulf %35, %35 : vector<32x128xf32>
    %cst_29 = arith.constant dense<0.000000e+00> : vector<128xf32>
    %41 = vector.multi_reduction <add>, %40, %cst_29 [0] : vector<32x128xf32> to vector<128xf32>
    %42 = vector.shape_cast %41 : vector<128xf32> to vector<1x128xf32>
    %cst_30 = arith.constant 3.125000e-02 : f32
    %43 = vector.broadcast %cst_30 : f32 to vector<1x128xf32>
    %44 = arith.mulf %42, %43 : vector<1x128xf32>
    %45 = arith.mulf %39, %39 : vector<1x128xf32>
    %46 = arith.subf %44, %45 : vector<1x128xf32>
    %cst_31 = arith.constant 0.000000e+00 : f32
    %47 = vector.broadcast %cst_31 : f32 to vector<1x128xf32>
    %48 = arith.maximumf %46, %47 : vector<1x128xf32>
    %49 = vector.broadcast %39 : vector<1x128xf32> to vector<32x128xf32>
    %50 = arith.subf %35, %49 : vector<32x128xf32>
    %cst_32 = arith.constant 9.99999974E-6 : f32
    %51 = vector.broadcast %cst_32 : f32 to vector<1x128xf32>
    %52 = arith.addf %48, %51 : vector<1x128xf32>
    %53 = math.rsqrt %52 : vector<1x128xf32>
    %54 = vector.broadcast %53 : vector<1x128xf32> to vector<32x128xf32>
    %55 = arith.mulf %50, %54 : vector<32x128xf32>
    %56 = vector.extract_strided_slice %10 {offsets = [0, 0], sizes = [1, 128], strides = [1, 1]} : vector<3x128xf32> to vector<1x128xf32>
    %57 = vector.broadcast %56 : vector<1x128xf32> to vector<32x128xf32>
    %58 = arith.mulf %55, %57 : vector<32x128xf32>
    %59 = vector.extract_strided_slice %11 {offsets = [0, 0], sizes = [1, 128], strides = [1, 1]} : vector<3x128xf32> to vector<1x128xf32>
    %60 = vector.broadcast %59 : vector<1x128xf32> to vector<32x128xf32>
    %61 = arith.addf %58, %60 : vector<32x128xf32>
    %cst_33 = arith.constant 0.000000e+00 : f32
    %62 = vector.broadcast %cst_33 : f32 to vector<32x128xf32>
    %63 = arith.maximumf %61, %62 : vector<32x128xf32>
    %64 = arith.addf %4, %63 : vector<32x128xf32>
    %65 = tpu.concatenate %12, %64, %12 in 0 : vector<8x128xf32>, vector<32x128xf32>, vector<8x128xf32> -> vector<48x128xf32>
    %66 = vector.extract_strided_slice %65 {offsets = [7, 0], sizes = [32, 128], strides = [1, 1]} : vector<48x128xf32> to vector<32x128xf32>
    %67 = vector.shape_cast %7 : vector<32x1xi1> to vector<32x1xi1>
    %68 = vector.broadcast %67 : vector<32x1xi1> to vector<32x128xi1>
    %69 = arith.select %68, %64, %66 : vector<32x128xi1>, vector<32x128xf32>
    %70 = vector.extract_strided_slice %65 {offsets = [9, 0], sizes = [32, 128], strides = [1, 1]} : vector<48x128xf32> to vector<32x128xf32>
    %71 = vector.shape_cast %9 : vector<32x1xi1> to vector<32x1xi1>
    %72 = vector.broadcast %71 : vector<32x1xi1> to vector<32x128xi1>
    %73 = arith.select %72, %64, %70 : vector<32x128xi1>, vector<32x128xf32>
    %74 = arith.truncf %69 : vector<32x128xf32> to vector<32x128xbf16>
    %c1_34 = arith.constant 1 : index
    %c0_35 = arith.constant 0 : index
    %c0_36 = arith.constant 0 : index
    %c0_37 = arith.constant 0 : index
    %75 = vector.load %arg2[%c1_34, %c0_35, %c0_36, %c0_37] : memref<3x3x128x128xbf16, #tpu.memory_space<vmem>>, vector<1x1x128x128xbf16>
    %76 = vector.shape_cast %75 : vector<1x1x128x128xbf16> to vector<128x128xbf16>
    %cst_38 = arith.constant dense<0.000000e+00> : vector<32x128xf32>
    %77 = tpu.matmul %74, %76, %cst_38 {dimension_numbers = #tpu.dot_dimension_numbers<[1], [0], [0], [1], [0, 0, 1, 1], [], []>} : vector<32x128xbf16>, vector<128x128xbf16>, vector<32x128xf32> -> vector<32x128xf32>
    %78 = arith.truncf %64 : vector<32x128xf32> to vector<32x128xbf16>
    %c1_39 = arith.constant 1 : index
    %c1_40 = arith.constant 1 : index
    %c0_41 = arith.constant 0 : index
    %c0_42 = arith.constant 0 : index
    %79 = vector.load %arg2[%c1_39, %c1_40, %c0_41, %c0_42] : memref<3x3x128x128xbf16, #tpu.memory_space<vmem>>, vector<1x1x128x128xbf16>
    %80 = vector.shape_cast %79 : vector<1x1x128x128xbf16> to vector<128x128xbf16>
    %cst_43 = arith.constant dense<0.000000e+00> : vector<32x128xf32>
    %81 = tpu.matmul %78, %80, %cst_43 {dimension_numbers = #tpu.dot_dimension_numbers<[1], [0], [0], [1], [0, 0, 1, 1], [], []>} : vector<32x128xbf16>, vector<128x128xbf16>, vector<32x128xf32> -> vector<32x128xf32>
    %82 = arith.addf %77, %81 : vector<32x128xf32>
    %83 = arith.truncf %73 : vector<32x128xf32> to vector<32x128xbf16>
    %c1_44 = arith.constant 1 : index
    %c2_45 = arith.constant 2 : index
    %c0_46 = arith.constant 0 : index
    %c0_47 = arith.constant 0 : index
    %84 = vector.load %arg2[%c1_44, %c2_45, %c0_46, %c0_47] : memref<3x3x128x128xbf16, #tpu.memory_space<vmem>>, vector<1x1x128x128xbf16>
    %85 = vector.shape_cast %84 : vector<1x1x128x128xbf16> to vector<128x128xbf16>
    %cst_48 = arith.constant dense<0.000000e+00> : vector<32x128xf32>
    %86 = tpu.matmul %83, %85, %cst_48 {dimension_numbers = #tpu.dot_dimension_numbers<[1], [0], [0], [1], [0, 0, 1, 1], [], []>} : vector<32x128xbf16>, vector<128x128xbf16>, vector<32x128xf32> -> vector<32x128xf32>
    %87 = arith.addf %82, %86 : vector<32x128xf32>
    %cst_49 = arith.constant dense<0.000000e+00> : vector<128xf32>
    %88 = vector.multi_reduction <add>, %87, %cst_49 [0] : vector<32x128xf32> to vector<128xf32>
    %89 = vector.shape_cast %88 : vector<128xf32> to vector<1x128xf32>
    %cst_50 = arith.constant 3.125000e-02 : f32
    %90 = vector.broadcast %cst_50 : f32 to vector<1x128xf32>
    %91 = arith.mulf %89, %90 : vector<1x128xf32>
    %92 = arith.mulf %87, %87 : vector<32x128xf32>
    %cst_51 = arith.constant dense<0.000000e+00> : vector<128xf32>
    %93 = vector.multi_reduction <add>, %92, %cst_51 [0] : vector<32x128xf32> to vector<128xf32>
    %94 = vector.shape_cast %93 : vector<128xf32> to vector<1x128xf32>
    %cst_52 = arith.constant 3.125000e-02 : f32
    %95 = vector.broadcast %cst_52 : f32 to vector<1x128xf32>
    %96 = arith.mulf %94, %95 : vector<1x128xf32>
    %97 = arith.mulf %91, %91 : vector<1x128xf32>
    %98 = arith.subf %96, %97 : vector<1x128xf32>
    %cst_53 = arith.constant 0.000000e+00 : f32
    %99 = vector.broadcast %cst_53 : f32 to vector<1x128xf32>
    %100 = arith.maximumf %98, %99 : vector<1x128xf32>
    %101 = vector.broadcast %91 : vector<1x128xf32> to vector<32x128xf32>
    %102 = arith.subf %87, %101 : vector<32x128xf32>
    %cst_54 = arith.constant 9.99999974E-6 : f32
    %103 = vector.broadcast %cst_54 : f32 to vector<1x128xf32>
    %104 = arith.addf %100, %103 : vector<1x128xf32>
    %105 = math.rsqrt %104 : vector<1x128xf32>
    %106 = vector.broadcast %105 : vector<1x128xf32> to vector<32x128xf32>
    %107 = arith.mulf %102, %106 : vector<32x128xf32>
    %108 = vector.extract_strided_slice %10 {offsets = [1, 0], sizes = [1, 128], strides = [1, 1]} : vector<3x128xf32> to vector<1x128xf32>
    %109 = vector.broadcast %108 : vector<1x128xf32> to vector<32x128xf32>
    %110 = arith.mulf %107, %109 : vector<32x128xf32>
    %111 = vector.extract_strided_slice %11 {offsets = [1, 0], sizes = [1, 128], strides = [1, 1]} : vector<3x128xf32> to vector<1x128xf32>
    %112 = vector.broadcast %111 : vector<1x128xf32> to vector<32x128xf32>
    %113 = arith.addf %110, %112 : vector<32x128xf32>
    %cst_55 = arith.constant 0.000000e+00 : f32
    %114 = vector.broadcast %cst_55 : f32 to vector<32x128xf32>
    %115 = arith.maximumf %113, %114 : vector<32x128xf32>
    %116 = arith.addf %64, %115 : vector<32x128xf32>
    %117 = tpu.concatenate %12, %116, %12 in 0 : vector<8x128xf32>, vector<32x128xf32>, vector<8x128xf32> -> vector<48x128xf32>
    %118 = vector.extract_strided_slice %117 {offsets = [7, 0], sizes = [32, 128], strides = [1, 1]} : vector<48x128xf32> to vector<32x128xf32>
    %119 = vector.shape_cast %7 : vector<32x1xi1> to vector<32x1xi1>
    %120 = vector.broadcast %119 : vector<32x1xi1> to vector<32x128xi1>
    %121 = arith.select %120, %116, %118 : vector<32x128xi1>, vector<32x128xf32>
    %122 = vector.extract_strided_slice %117 {offsets = [9, 0], sizes = [32, 128], strides = [1, 1]} : vector<48x128xf32> to vector<32x128xf32>
    %123 = vector.shape_cast %9 : vector<32x1xi1> to vector<32x1xi1>
    %124 = vector.broadcast %123 : vector<32x1xi1> to vector<32x128xi1>
    %125 = arith.select %124, %116, %122 : vector<32x128xi1>, vector<32x128xf32>
    %126 = arith.truncf %121 : vector<32x128xf32> to vector<32x128xbf16>
    %c2_56 = arith.constant 2 : index
    %c0_57 = arith.constant 0 : index
    %c0_58 = arith.constant 0 : index
    %c0_59 = arith.constant 0 : index
    %127 = vector.load %arg2[%c2_56, %c0_57, %c0_58, %c0_59] : memref<3x3x128x128xbf16, #tpu.memory_space<vmem>>, vector<1x1x128x128xbf16>
    %128 = vector.shape_cast %127 : vector<1x1x128x128xbf16> to vector<128x128xbf16>
    %cst_60 = arith.constant dense<0.000000e+00> : vector<32x128xf32>
    %129 = tpu.matmul %126, %128, %cst_60 {dimension_numbers = #tpu.dot_dimension_numbers<[1], [0], [0], [1], [0, 0, 1, 1], [], []>} : vector<32x128xbf16>, vector<128x128xbf16>, vector<32x128xf32> -> vector<32x128xf32>
    %130 = arith.truncf %116 : vector<32x128xf32> to vector<32x128xbf16>
    %c2_61 = arith.constant 2 : index
    %c1_62 = arith.constant 1 : index
    %c0_63 = arith.constant 0 : index
    %c0_64 = arith.constant 0 : index
    %131 = vector.load %arg2[%c2_61, %c1_62, %c0_63, %c0_64] : memref<3x3x128x128xbf16, #tpu.memory_space<vmem>>, vector<1x1x128x128xbf16>
    %132 = vector.shape_cast %131 : vector<1x1x128x128xbf16> to vector<128x128xbf16>
    %cst_65 = arith.constant dense<0.000000e+00> : vector<32x128xf32>
    %133 = tpu.matmul %130, %132, %cst_65 {dimension_numbers = #tpu.dot_dimension_numbers<[1], [0], [0], [1], [0, 0, 1, 1], [], []>} : vector<32x128xbf16>, vector<128x128xbf16>, vector<32x128xf32> -> vector<32x128xf32>
    %134 = arith.addf %129, %133 : vector<32x128xf32>
    %135 = arith.truncf %125 : vector<32x128xf32> to vector<32x128xbf16>
    %c2_66 = arith.constant 2 : index
    %c2_67 = arith.constant 2 : index
    %c0_68 = arith.constant 0 : index
    %c0_69 = arith.constant 0 : index
    %136 = vector.load %arg2[%c2_66, %c2_67, %c0_68, %c0_69] : memref<3x3x128x128xbf16, #tpu.memory_space<vmem>>, vector<1x1x128x128xbf16>
    %137 = vector.shape_cast %136 : vector<1x1x128x128xbf16> to vector<128x128xbf16>
    %cst_70 = arith.constant dense<0.000000e+00> : vector<32x128xf32>
    %138 = tpu.matmul %135, %137, %cst_70 {dimension_numbers = #tpu.dot_dimension_numbers<[1], [0], [0], [1], [0, 0, 1, 1], [], []>} : vector<32x128xbf16>, vector<128x128xbf16>, vector<32x128xf32> -> vector<32x128xf32>
    %139 = arith.addf %134, %138 : vector<32x128xf32>
    %cst_71 = arith.constant dense<0.000000e+00> : vector<128xf32>
    %140 = vector.multi_reduction <add>, %139, %cst_71 [0] : vector<32x128xf32> to vector<128xf32>
    %141 = vector.shape_cast %140 : vector<128xf32> to vector<1x128xf32>
    %cst_72 = arith.constant 3.125000e-02 : f32
    %142 = vector.broadcast %cst_72 : f32 to vector<1x128xf32>
    %143 = arith.mulf %141, %142 : vector<1x128xf32>
    %144 = arith.mulf %139, %139 : vector<32x128xf32>
    %cst_73 = arith.constant dense<0.000000e+00> : vector<128xf32>
    %145 = vector.multi_reduction <add>, %144, %cst_73 [0] : vector<32x128xf32> to vector<128xf32>
    %146 = vector.shape_cast %145 : vector<128xf32> to vector<1x128xf32>
    %cst_74 = arith.constant 3.125000e-02 : f32
    %147 = vector.broadcast %cst_74 : f32 to vector<1x128xf32>
    %148 = arith.mulf %146, %147 : vector<1x128xf32>
    %149 = arith.mulf %143, %143 : vector<1x128xf32>
    %150 = arith.subf %148, %149 : vector<1x128xf32>
    %cst_75 = arith.constant 0.000000e+00 : f32
    %151 = vector.broadcast %cst_75 : f32 to vector<1x128xf32>
    %152 = arith.maximumf %150, %151 : vector<1x128xf32>
    %153 = vector.broadcast %143 : vector<1x128xf32> to vector<32x128xf32>
    %154 = arith.subf %139, %153 : vector<32x128xf32>
    %cst_76 = arith.constant 9.99999974E-6 : f32
    %155 = vector.broadcast %cst_76 : f32 to vector<1x128xf32>
    %156 = arith.addf %152, %155 : vector<1x128xf32>
    %157 = math.rsqrt %156 : vector<1x128xf32>
    %158 = vector.broadcast %157 : vector<1x128xf32> to vector<32x128xf32>
    %159 = arith.mulf %154, %158 : vector<32x128xf32>
    %160 = vector.extract_strided_slice %10 {offsets = [2, 0], sizes = [1, 128], strides = [1, 1]} : vector<3x128xf32> to vector<1x128xf32>
    %161 = vector.broadcast %160 : vector<1x128xf32> to vector<32x128xf32>
    %162 = arith.mulf %159, %161 : vector<32x128xf32>
    %163 = vector.extract_strided_slice %11 {offsets = [2, 0], sizes = [1, 128], strides = [1, 1]} : vector<3x128xf32> to vector<1x128xf32>
    %164 = vector.broadcast %163 : vector<1x128xf32> to vector<32x128xf32>
    %165 = arith.addf %162, %164 : vector<32x128xf32>
    %cst_77 = arith.constant 0.000000e+00 : f32
    %166 = vector.broadcast %cst_77 : f32 to vector<32x128xf32>
    %167 = arith.maximumf %165, %166 : vector<32x128xf32>
    %168 = vector.extract_strided_slice %167 {offsets = [0, 0], sizes = [32, 8], strides = [1, 1]} : vector<32x128xf32> to vector<32x8xf32>
    %c0_78 = arith.constant 0 : index
    %c0_79 = arith.constant 0 : index
    %169 = vector.load %arg6[%c0_78, %c0_79] : memref<32x8xf32, #tpu.memory_space<vmem>>, vector<32x8xf32>
    tpu.vector_store %arg6[%c0_78, %c0_79], %168 {strides = array<i32>} : memref<32x8xf32, #tpu.memory_space<vmem>>, vector<32x8xf32>,
    return
  }
  func.func @transform_0(%arg0: i32) -> (i32, i32) {
    %c0_i32 = arith.constant 0 : i32
    %c0_i32_0 = arith.constant 0 : i32
    %c0_i32_1 = arith.constant 0 : i32
    return %c0_i32, %c0_i32_0 : i32, i32
  }
  func.func @transform_1(%arg0: i32) -> (i32, i32, i32, i32) {
    %c0_i32 = arith.constant 0 : i32
    %c0_i32_0 = arith.constant 0 : i32
    %c0_i32_1 = arith.constant 0 : i32
    %c0_i32_2 = arith.constant 0 : i32
    %c0_i32_3 = arith.constant 0 : i32
    return %c0_i32, %c0_i32_0, %c0_i32_1, %c0_i32_2 : i32, i32, i32, i32
  }
  func.func @transform_2(%arg0: i32) -> (i32, i32) {
    %c0_i32 = arith.constant 0 : i32
    %c0_i32_0 = arith.constant 0 : i32
    %c0_i32_1 = arith.constant 0 : i32
    return %c0_i32, %c0_i32_0 : i32, i32
  }
  func.func @transform_3(%arg0: i32) -> (i32, i32) {
    %c0_i32 = arith.constant 0 : i32
    %c0_i32_0 = arith.constant 0 : i32
    %c0_i32_1 = arith.constant 0 : i32
    return %c0_i32, %c0_i32_0 : i32, i32
  }
  func.func @transform_4(%arg0: i32) -> (i32, i32) {
    %c0_i32 = arith.constant 0 : i32
    %c0_i32_0 = arith.constant 0 : i32
    %c0_i32_1 = arith.constant 0 : i32
    return %c0_i32, %c0_i32_0 : i32, i32
  }
  func.func @transform_5(%arg0: i32) -> (i32, i32) {
    %c0_i32 = arith.constant 0 : i32
    %c0_i32_0 = arith.constant 0 : i32
    %c0_i32_1 = arith.constant 0 : i32
    return %c0_i32, %c0_i32_0 : i32, i32
  }
}

</mosaic_0001>

<bundles_post_ra>
// kernel: forward.1
= control target key start
LH: loop header
LB: loop body
LE: loop exit
PB: predicated region body
PF: predicated region fallthrough
CT: control target
= control target key end

     0   :  { %10 = vsyncpa [#allocation4], 0  ;;  %s1611_s21 = smov [#allocation3]   ;;  %s1612_s23 = smov 64   ;;  %s1929_s0 = inlined_call_operand.vmem [shape: f32[32,4], index: 0, kind: input, shape index: {}]   ;;  %s1930_s1 = inlined_call_operand.hbm [shape: bf16[3,3,128,128], index: 1, kind: input, shape index: {}]   ;;  %s1931_s2 = inlined_call_operand.vmem [shape: f32[3,128], index: 2, kind: input, shape index: {}]   ;;  %s1932_s3 = inlined_call_operand.vmem [shape: f32[3,128], index: 3, kind: input, shape index: {}]   ;;  %s1933_s4 = inlined_call_operand.vmem [shape: s32[32,1], index: 4, kind: input, shape index: {}]   ;;  %s1934_s5 = inlined_call_operand.vmem [shape: f32[32,8], index: 5, kind: output, shape index: {}]  }
   0x1   :  { %s17_s20 = sshll.u32 %s1930_s1, 4  ;;  %s19_s22 = sshll.u32 %s1611_s21, 4  ;;  %s18_s20 = int_to_ptr.hbm [resolvable:$true] %s17_s20  ;;  %s20_s22 = int_to_ptr.vmem [resolvable:$true] %s19_s22 }
   0x2   :  { %s1613_s24 = smov 4  }
   0x3   :  { %25 = dma.hbm_to_vmem [thread:$0]  %s18_s20, 9216, %s20_s22, [#allocation4], %s1612_s23, %s1612_s23, %s1613_s24  }
   0x4   :  { %1609 = dma.done.wait [#allocation4], 9216  }
   0x5   :  { %1610 = vsyncadd [#allocation4], 4294958080  ;;  %v1614_v0 = vmov 0   ;;  %v53_v1 = vld [vmem:[%s1933_s4] sm:$0xff]  ;;  %v1506_v2 = vld [vmem:[#allocation3 + $0x78] sm:$0xff]  ;;  %v1615_v29 = vmov 0.0  }
   0x6   :  { %1577 = vset.pattern.permute.xlu1 %v1614_v0  ;;  %1576 = vset.pattern.permute.xlu0 %v1614_v0  ;;  %vm61_vm0 = vcmp.eq.s32.totalorder %v53_v1, 15  ;;  %vm57_vm1 = vcmp.eq.s32.totalorder %v53_v1, 0  ;;  %v54_v5 = vld [vmem:[%s1933_s4 + $0x8] sm:$0xff]  ;;  %v55_v6 = vld [vmem:[%s1933_s4 + $0x10] sm:$0xff]  ;;  %v1498_v7 = vld [vmem:[#allocation3 + $0x38] sm:$0xff]  ;;  %36 = vst [vmem:[#allocation2] sm:$0xff] %v1615_v29 }
   0x7   :  { %1578 = vset.pattern.permute.xlu2 %v1614_v0  ;;  %v110_v3 = vsel %vm61_vm0, 1, %v1614_v0  ;;  %v67_v4 = vsel %vm57_vm1, 1, %v1614_v0  ;;  %vm63_vm2 = vcmp.eq.s32.totalorder %v55_v6, 15  ;;  %v1514_v8 = vld [vmem:[#allocation3 + $0xb8] sm:$0xff]  ;;  %233 = vmatpush.bf16.msra.mxu0 %v1506_v2  ;;  %v1505_v10 = vld [vmem:[#allocation3 + $0x70] sm:$0xff]  ;;  %vm62_vm3 = vcmp.eq.s32.totalorder %v54_v5, 15 }
   0x8   :  { %115 = vperm.xlu0 %1576, %v110_v3   ;;  %72 = vperm.xlu1 %1577, %v67_v4   ;;  %v112_v9 = vsel %vm63_vm2, 1, %v1614_v0  ;;  %v1497_v11 = vld [vmem:[#allocation3 + $0x30] sm:$0xff]  ;;  %vm58_vm4 = vcmp.eq.s32.totalorder %v54_v5, 0  ;;  %v56_v13 = vld [vmem:[%s1933_s4 + $0x18] sm:$0xff]  ;;  %v111_v14 = vsel %vm62_vm3, 1, %v1614_v0  ;;  %v1504_v16 = vld [vmem:[#allocation3 + $0x68] sm:$0xff] }
   0x9   :  { %300 = vmatpush.bf16.msra.mxu1 %v1498_v7  ;;  %121 = vperm.xlu2 %1578, %v112_v9   ;;  %v1513_v12 = vld [vmem:[#allocation3 + $0xb0] sm:$0xff]  ;;  %vm64_vm5 = vcmp.eq.s32.totalorder %v56_v13, 15  ;;  %v68_v15 = vsel %vm58_vm4, 1, %v1614_v0  ;;  %v1496_v17 = vld [vmem:[#allocation3 + $0x28] sm:$0xff]  ;;  %v1503_v20 = vld [vmem:[#allocation3 + $0x60] sm:$0xff]  ;;  %vm59_vm6 = vcmp.eq.s32.totalorder %v55_v6, 0 }
   0xa   :  { %386 = vmatpush.bf16.msra.mxu2 %v1514_v8  ;;  %v1512_v18 = vld [vmem:[#allocation3 + $0xa8] sm:$0xff]  ;;  %v113_v19 = vsel %vm64_vm5, 1, %v1614_v0  ;;  %v1495_v21 = vld [vmem:[#allocation3 + $0x20] sm:$0xff]  ;;  %vm60_vm7 = vcmp.eq.s32.totalorder %v56_v13, 0  ;;  %v69_v23 = vsel %vm59_vm6, 1, %v1614_v0  ;;  %v1502_v25 = vld [vmem:[#allocation3 + $0x58] sm:$0xff] }
   0xb   :  { %234 = vmatpush.bf16.msra.mxu0 %v1505_v10  ;;  %v1511_v22 = vld [vmem:[#allocation3 + $0xa0] sm:$0xff]  ;;  %v70_v24 = vsel %vm60_vm7, 1, %v1614_v0  ;;  %v1494_v26 = vld [vmem:[#allocation3 + $0x18] sm:$0xff]  ;;  %v1501_v28 = vld [vmem:[#allocation3 + $0x50] sm:$0xff]  ;;  %vm44_vm8 = vcmask 31744   ;;  %37 = vst [vmem:[#allocation2 + $0x8] sm:$0xff] %v1615_v29 }
   0xc   :  { %v1510_v27 = vld [vmem:[#allocation3 + $0x98] sm:$0xff]  ;;  %v40_v30 = vld [vmem:[%s1929_s0] sm:$0xff]  ;;  %v41_v31 = vld [vmem:[%s1929_s0 + $0x8] sm:$0xff]  ;;  %38 = vst [vmem:[#allocation2 + $0x10] sm:$0xff] %v1615_v29  ;;  %v1698_v50 = vrot.slane %v1615_v29, 7  ;;  %vm92_vm9 = vcmask 1040384  }
   0xd   :  { %301 = vmatpush.bf16.msra.mxu1 %v1497_v11  ;;  %45 = vst.msk [vmem:[#allocation2] sm:$0xff] %vm44_vm8, %v40_v30  ;;  %v42_v32 = vld [vmem:[%s1929_s0 + $0x10] sm:$0xff]  ;;  %v1500_v33 = vld [vmem:[#allocation3 + $0x48] sm:$0xff]  ;;  %v1499_v36 = vld [vmem:[#allocation3 + $0x40] sm:$0xff]  ;;  %vm130_vm10 = vcmask 1046528   ;;  %v1733_v5 = vrot.slane %v1615_v29, 1 }
   0xe   :  { %387 = vmatpush.bf16.msra.mxu2 %v1513_v12  ;;  %46 = vst.msk [vmem:[#allocation2 + $0x8] sm:$0xff] %vm44_vm8, %v41_v31  ;;  %v1493_v34 = vld [vmem:[#allocation3 + $0x10] sm:$0xff]  ;;  %v1492_v37 = vld [vmem:[#allocation3 + $0x8] sm:$0xff]  ;;  %v43_v41 = vld [vmem:[%s1929_s0 + $0x18] sm:$0xff] }
   0xf   :  { %235 = vmatpush.bf16.msra.mxu0 %v1504_v16  ;;  %39 = vst [vmem:[#allocation2 + $0x18] sm:$0xff] %v1615_v29  ;;  %v1509_v35 = vld [vmem:[#allocation3 + $0x90] sm:$0xff]  ;;  %v1508_v38 = vld [vmem:[#allocation3 + $0x88] sm:$0xff]  ;;  %v1491_v43 = vld [vmem:[#allocation3] sm:$0xff] }
  0x10   :  { %118 = vperm.xlu0 %1576, %v111_v14   ;;  %75 = vperm.xlu1 %1577, %v68_v15   ;;  %47 = vst.msk [vmem:[#allocation2 + $0x10] sm:$0xff] %vm44_vm8, %v42_v32  ;;  %v1507_v44 = vld [vmem:[#allocation3 + $0x80] sm:$0xff] }
  0x11   :  { %302 = vmatpush.bf16.msra.mxu1 %v1496_v17  ;;  %124 = vperm.xlu2 %1578, %v113_v19   ;;  %48 = vst.msk [vmem:[#allocation2 + $0x18] sm:$0xff] %vm44_vm8, %v43_v41 }
  0x12   :  { %388 = vmatpush.bf16.msra.mxu2 %v1512_v18 }
  0x13   :  { %236 = vmatpush.bf16.msra.mxu0 %v1503_v20 }
  0x14   :  { %v1677_v39 = vld [vmem:[#allocation2] sm:$0xff] }
  0x15   :  { %303 = vmatpush.bf16.msra.mxu1 %v1495_v21  ;;  %v1679_v40 = vld [vmem:[#allocation2 + $0x8] sm:$0xff]  ;;  %v94_v51 = vrot.slane %v1677_v39, 7  ;;  %v131_v52 = vrot.slane %v1677_v39, 1 }
  0x16   :  { %389 = vmatpush.bf16.msra.mxu2 %v1511_v22  ;;  %v166_v42 = vpack.c.bf16 %v1679_v40, %v1677_v39  ;;  %v132_v53 = vrot.slane %v1679_v40, 1  ;;  %v96_v54 = vrot.slane %v1679_v40, 7 }
  0x17   :  { %237 = vmatpush.bf16.msra.mxu0 %v1502_v25  ;;  %v1687_v45 = vld [vmem:[#allocation2 + $0x10] sm:$0xff]  ;;  %v95_v56 = vsel %vm92_vm9, %v1698_v50, %v94_v51 }
  0x18   :  { %78 = vperm.xlu0 %1576, %v69_v23   ;;  %81 = vperm.xlu1 %1577, %v70_v24   ;;  %v1689_v46 = vld [vmem:[#allocation2 + $0x18] sm:$0xff]  ;;  %v134_v55 = vrot.slane %v1687_v45, 1  ;;  %v133_v57 = vsel %vm130_vm10, %v131_v52, %v132_v53  ;;  %v97_v59 = vsel %vm92_vm9, %v94_v51, %v96_v54  ;;  %v98_v7 = vrot.slane %v1687_v45, 7 }
  0x19   :  { %304 = vmatpush.bf16.msra.mxu1 %v1494_v26  ;;  %v167_v47 = vpack.c.bf16 %v1689_v46, %v1687_v45  ;;  %v136_v6 = vrot.slane %v1689_v46, 1  ;;  %v100_v8 = vrot.slane %v1689_v46, 7 }
  0x1a   :  { %390 = vmatpush.bf16.msra.mxu2 %v1510_v27  ;;  %v135_v60 = vsel %vm130_vm10, %v132_v53, %v134_v55  ;;  %v99_v13 = vsel %vm92_vm9, %v96_v54, %v98_v7 }
  0x1b   :  { %238 = vmatpush.bf16.msra.mxu0 %v1501_v28  ;;  %v139_v12 = vsel %vm130_vm10, %v136_v6, %v1733_v5  ;;  %v101_v14 = vsel %vm92_vm9, %v98_v7, %v100_v8  ;;  %v137_v15 = vsel %vm130_vm10, %v134_v55, %v136_v6  ;;  %v1527_v7 = vld [vmem:[#allocation3 + $0x120] sm:$0xff]  ;;  %v1520_v8 = vld [vmem:[#allocation3 + $0xe8] sm:$0xff] }
  0x1d   :  { %305 = vmatpush.bf16.msra.mxu1 %v1493_v34 }
  0x1e   :  { %391 = vmatpush.bf16.msra.mxu2 %v1509_v35  ;;  %v1530_v35 = vld [vmem:[#allocation3 + $0x138] sm:$0xff] }
  0x1f   :  { %239 = vmatpush.bf16.msra.mxu0 %v1500_v33  ;;  %595 = vmatpush.bf16.msra.mxu3 %v1530_v35 }
  0x21   :  { %306 = vmatpush.bf16.msra.mxu1 %v1492_v37 }
  0x22   :  { %392 = vmatpush.bf16.msra.mxu2 %v1508_v38 }
  0x23   :  { %240 = vmatpush.bf16.msra.mxu0 %v1499_v36 }
  0x25   :  { %307 = vmatpush.bf16.msra.mxu1 %v1491_v43  ;;  %v1522_v43 = vld [vmem:[#allocation3 + $0xf8] sm:$0xff] }
  0x26   :  { %241 = vmatmul.bf16.vlgmr.msra.gmra.mxu0 %v166_v42  ;;  %393 = vmatpush.bf16.msra.mxu2 %v1507_v44  ;;  %v1529_v42 = vld [vmem:[#allocation3 + $0x130] sm:$0xff]  ;;  %v1538_v44 = vld [vmem:[#allocation3 + $0x178] sm:$0xff] }
  0x27   :  { %596 = vmatpush.bf16.msra.mxu3 %v1529_v42  ;;  %662 = vmatpush.bf16.msrb.mxu0 %v1522_v43  ;;  %v1523_v42 = vld [vmem:[#allocation3 + $0x100] sm:$0xff]  ;;  %v1516_v43 = vld [vmem:[#allocation3 + $0xc8] sm:$0xff] }
  0x29   :  { %748 = vmatpush.bf16.msrb.mxu1 %v1538_v44  ;;  %v1532_v44 = vld [vmem:[#allocation3 + $0x148] sm:$0xff] }
  0x36   :  { %246 = vmatmul.bf16.gmra.mxu0 %v167_v47 }
  0x63   :  { %v1710_v58 = vpop.permute.xlu2 %121 }
  0x64   :  { %vm128_vm15 = vcmp.eq.s32.totalorder %v1710_v58, 1 }
  0x65   :  { %v146_v19 = vsel %vm128_vm15, %v1687_v45, %v137_v15 }
  0x6b   :  { %v1738_v9 = vpop.permute.xlu2 %124 }
  0x6c   :  { %vm129_vm0 = vcmp.eq.s32.totalorder %v1738_v9, 1 }
  0x6d   :  { %v147_v16 = vsel %vm129_vm0, %v1689_v46, %v139_v12  ;;  %v1536_v12 = vld [vmem:[#allocation3 + $0x168] sm:$0xff] }
  0x6e   :  { %v320_v21 = vpack.c.bf16 %v147_v16, %v146_v19  ;;  %v1535_v19 = vld [vmem:[#allocation3 + $0x160] sm:$0xff] }
  0x7a   :  { %v1693_v48 = vpop.permute.xlu0 %115  ;;  %v1695_v49 = vpop.permute.xlu1 %72 }
  0x7b   :  { %vm126_vm11 = vcmp.eq.s32.totalorder %v1693_v48, 1  ;;  %vm83_vm12 = vcmp.eq.s32.totalorder %v1695_v49, 1 }
  0x7c   :  { %v106_v63 = vsel %vm83_vm12, %v1677_v39, %v95_v56  ;;  %v144_v1 = vsel %vm126_vm11, %v1677_v39, %v133_v57 }
  0x82   :  { %v1714_v61 = vpop.permute.xlu0 %118  ;;  %v1716_v62 = vpop.permute.xlu1 %75 }
  0x83   :  { %vm127_vm13 = vcmp.eq.s32.totalorder %v1714_v61, 1  ;;  %vm84_vm14 = vcmp.eq.s32.totalorder %v1716_v62, 1 }
  0x84   :  { %v107_v0 = vsel %vm84_vm14, %v1679_v40, %v97_v59  ;;  %v145_v2 = vsel %vm127_vm13, %v1679_v40, %v135_v60  ;;  %v1528_v60 = vld [vmem:[#allocation3 + $0x128] sm:$0xff] }
  0x85   :  { %v148_v3 = vpack.c.bf16 %v107_v0, %v106_v63  ;;  %v319_v4 = vpack.c.bf16 %v145_v2, %v144_v1  ;;  %v1521_v63 = vld [vmem:[#allocation3 + $0xf0] sm:$0xff]  ;;  %597 = vmatpush.bf16.msra.mxu3 %v1528_v60  ;;  %v1788_v60 = vld [vmem:[%s1931_s2] sm:$0x7] }
  0x86   :  { %v1537_v0 = vld [vmem:[#allocation3 + $0x170] sm:$0xff]  ;;  %663 = vmatpush.bf16.msrb.mxu0 %v1521_v63 }
  0x87   :  { %308 = vmatmul.bf16.vlgmr.msra.gmra.mxu1 %v148_v3  ;;  %394 = vmatmul.bf16.vlgmr.msra.gmra.mxu2 %v319_v4 }
  0x88   :  { %749 = vmatpush.bf16.msrb.mxu1 %v1537_v0  ;;  %v1793_v0 = vld [vmem:[%s1932_s3] sm:$0x7] }
  0x89   :  { %598 = vmatpush.bf16.msra.mxu3 %v1527_v7 }
  0x8a   :  { %v1740_v10 = vpop.permute.xlu0 %78  ;;  %v1742_v11 = vpop.permute.xlu1 %81  ;;  %664 = vmatpush.bf16.msrb.mxu0 %v1520_v8 }
  0x8b   :  { %vm85_vm1 = vcmp.eq.s32.totalorder %v1740_v10, 1  ;;  %vm86_vm2 = vcmp.eq.s32.totalorder %v1742_v11, 1 }
  0x8c   :  { %v108_v17 = vsel %vm85_vm1, %v1687_v45, %v99_v13  ;;  %v109_v18 = vsel %vm86_vm2, %v1689_v46, %v101_v14  ;;  %750 = vmatpush.bf16.msrb.mxu1 %v1536_v12  ;;  %v460_v12 = vperm.slane %v1793_v0, 0 }
  0x8d   :  { %v149_v20 = vpack.c.bf16 %v109_v18, %v108_v17  ;;  %v1526_v17 = vld [vmem:[#allocation3 + $0x118] sm:$0xff]  ;;  %v1519_v18 = vld [vmem:[#allocation3 + $0xe0] sm:$0xff] }
  0x8e   :  { %599 = vmatpush.bf16.msra.mxu3 %v1526_v17  ;;  %665 = vmatpush.bf16.msrb.mxu0 %v1519_v18 }
  0x90   :  { %751 = vmatpush.bf16.msrb.mxu1 %v1535_v19 }
  0x97   :  { %313 = vmatmul.bf16.gmra.mxu1 %v149_v20  ;;  %399 = vmatmul.bf16.gmra.mxu2 %v320_v21 }
  0xa3   :  { %v242_v22 = vpop.f32.mrf.mxu0 }
  0xab   :  { %v244_v25 = vpop.f32.mrf.mxu0 }
  0xb3   :  { %v247_v29 = vpop.f32.mrf.mxu0 }
  0xbb   :  { %v249_v51 = vpop.f32.mrf.mxu0 }
 0x104   :  { %v309_v23 = vpop.f32.mrf.mxu1 }
 0x105   :  { %v310_v31 = vadd.f32 %v309_v23, %v242_v22 }
 0x10a   :  { %v395_v24 = vpop.f32.mrf.mxu2 }
 0x10b   :  { %v1767_v36 = vadd.f32 %v395_v24, %v310_v31  ;;  %v1525_v24 = vld [vmem:[#allocation3 + $0x110] sm:$0xff]  ;;  %v1524_v31 = vld [vmem:[#allocation3 + $0x108] sm:$0xff] }
 0x10c   :  { %v311_v26 = vpop.f32.mrf.mxu1  ;;  %600 = vmatpush.bf16.msra.mxu3 %v1525_v24 }
 0x10d   :  { %v312_v30 = vadd.f32 %v311_v26, %v244_v25  ;;  %v419_v47 = vmul.f32 %v1767_v36, %v1767_v36  ;;  %v1518_v25 = vld [vmem:[#allocation3 + $0xd8] sm:$0xff] }
 0x10e   :  { %v1534_v26 = vld [vmem:[#allocation3 + $0x158] sm:$0xff]  ;;  %666 = vmatpush.bf16.msrb.mxu0 %v1518_v25 }
 0x10f   :  { %752 = vmatpush.bf16.msrb.mxu1 %v1534_v26 }
 0x110   :  { %601 = vmatpush.bf16.msra.mxu3 %v1524_v31 }
 0x112   :  { %v397_v27 = vpop.f32.mrf.mxu2 }
 0x113   :  { %v1765_v33 = vadd.f32 %v397_v27, %v312_v30 }
 0x114   :  { %v314_v28 = vpop.f32.mrf.mxu1  ;;  %602 = vmatpush.bf16.msra.mxu3 %v1523_v42 }
 0x115   :  { %v315_v34 = vadd.f32 %v314_v28, %v247_v29  ;;  %v420_v41 = vmul.f32 %v1765_v33, %v1765_v33  ;;  %v409_v52 = vadd.f32 %v1765_v33, %v1767_v36 }
 0x117   :  { %v423_v56 = vadd.f32 %v420_v41, %v419_v47 }
 0x11a   :  { %v400_v32 = vpop.f32.mrf.mxu2 }
 0x11b   :  { %v1769_v37 = vadd.f32 %v400_v32, %v315_v34  ;;  %v1517_v32 = vld [vmem:[#allocation3 + $0xd0] sm:$0xff] }
 0x11c   :  { %v316_v38 = vpop.f32.mrf.mxu1  ;;  %v1533_v34 = vld [vmem:[#allocation3 + $0x150] sm:$0xff]  ;;  %667 = vmatpush.bf16.msrb.mxu0 %v1517_v32 }
 0x11d   :  { %v421_v53 = vmul.f32 %v1769_v37, %v1769_v37  ;;  %v317_v54 = vadd.f32 %v316_v38, %v249_v51  ;;  %v410_v57 = vadd.f32 %v409_v52, %v1769_v37  ;;  %753 = vmatpush.bf16.msrb.mxu1 %v1533_v34  ;;  %v1515_v52 = vld [vmem:[#allocation3 + $0xc0] sm:$0xff] }
 0x11f   :  { %v424_v1 = vadd.f32 %v423_v56, %v421_v53  ;;  %v1531_v53 = vld [vmem:[#allocation3 + $0x140] sm:$0xff] }
 0x120   :  { %668 = vmatpush.bf16.msrb.mxu0 %v1516_v43 }
 0x121   :  { %754 = vmatpush.bf16.msrb.mxu1 %v1532_v44 }
 0x122   :  { %v402_v55 = vpop.f32.mrf.mxu2 }
 0x123   :  { %v1780_v59 = vadd.f32 %v402_v55, %v317_v54 }
 0x124   :  { %669 = vmatpush.bf16.msrb.mxu0 %v1515_v52 }
 0x125   :  { %v411_v2 = vadd.f32 %v410_v57, %v1780_v59  ;;  %v422_v3 = vmul.f32 %v1780_v59, %v1780_v59  ;;  %755 = vmatpush.bf16.msrb.mxu1 %v1531_v53 }
 0x127   :  { %v412_v4 = vrot.slane %v411_v2, 4  ;;  %v425_v6 = vadd.f32 %v424_v1, %v422_v3 }
 0x129   :  { %v413_v13 = vadd.f32 %v412_v4, %v411_v2  ;;  %v426_v14 = vrot.slane %v425_v6, 4  ;;  %v455_v2 = vperm.slane %v1788_v60, 0 }
 0x12b   :  { %v414_v15 = vrot.slane %v413_v13, 2  ;;  %v427_v16 = vadd.f32 %v426_v14, %v425_v6 }
 0x12d   :  { %v415_v20 = vadd.f32 %v414_v15, %v413_v13  ;;  %v428_v21 = vrot.slane %v427_v16, 2 }
 0x12f   :  { %v416_v22 = vrot.slane %v415_v20, 1  ;;  %v429_v23 = vadd.f32 %v428_v21, %v427_v16 }
 0x131   :  { %v417_v27 = vadd.f32 %v416_v22, %v415_v20  ;;  %v430_v28 = vrot.slane %v429_v23, 1 }
 0x133   :  { %v418_v29 = vmul.f32 0.03125, %v417_v27  ;;  %v431_v30 = vadd.f32 %v430_v28, %v429_v23 }
 0x135   :  { %v432_v35 = vmul.f32 0.03125, %v431_v30  ;;  %v433_v38 = vmul.f32 %v418_v29, %v418_v29  ;;  %v436_v3 = vsub.f32 %v1767_v36, %v418_v29  ;;  %v437_v4 = vsub.f32 %v1765_v33, %v418_v29 }
 0x136   :  { %v438_v6 = vsub.f32 %v1769_v37, %v418_v29  ;;  %v439_v7 = vsub.f32 %v1780_v59, %v418_v29 }
 0x137   :  { %v434_v41 = vsub.f32 %v432_v35, %v433_v38 }
 0x139   :  { %v435_v47 = vmax.f32 %v434_v41, 0.0 }
 0x13b   :  { %v440_v51 = vadd.f32 1e-05, %v435_v47 }
 0x13d   :  { %1579 = vrsqrt.f32 %v440_v51  ;;  %vm447_vm4 = vweird.f32 %v440_v51 }
 0x143   :  { %v1580_v54 = vpop.eup %1579 }
 0x144   :  { %v442_v55 = vmul.f32 %v1580_v54, %v440_v51  ;;  %vm448_vm3 = vweird.f32 %v1580_v54 }
 0x145   :  { %vm449_vm5 = vmor %vm447_vm4, %vm448_vm3 }
 0x146   :  { %v443_v56 = vmul.f32 %v1580_v54, %v442_v55 }
 0x148   :  { %v444_v57 = vmul.f32 0.5, %v443_v56 }
 0x14a   :  { %v445_v63 = vsub.f32 1.5, %v444_v57 }
 0x14c   :  { %v446_v1 = vmul.f32 %v1580_v54, %v445_v63 }
 0x14e   :  { %v450_v8 = vsel %vm449_vm5, %v1580_v54, %v446_v1 }
 0x14f   :  { %v451_v13 = vmul.f32 %v450_v8, %v436_v3  ;;  %v452_v14 = vmul.f32 %v450_v8, %v437_v4  ;;  %v453_v15 = vmul.f32 %v450_v8, %v438_v6  ;;  %v454_v16 = vmul.f32 %v450_v8, %v439_v7 }
 0x151   :  { %v456_v17 = vmul.f32 %v455_v2, %v451_v13  ;;  %v457_v18 = vmul.f32 %v455_v2, %v452_v14  ;;  %v458_v19 = vmul.f32 %v455_v2, %v453_v15  ;;  %v459_v20 = vmul.f32 %v455_v2, %v454_v16 }
 0x153   :  { %v461_v21 = vadd.f32 %v460_v12, %v456_v17  ;;  %v462_v36 = vadd.f32 %v460_v12, %v457_v18  ;;  %v463_v22 = vadd.f32 %v460_v12, %v458_v19  ;;  %v464_v24 = vadd.f32 %v460_v12, %v459_v20 }
 0x155   :  { %v465_v33 = vmax.f32 %v461_v21, 0.0  ;;  %v466_v23 = vmax.f32 %v462_v36, 0.0  ;;  %v467_v37 = vmax.f32 %v463_v22, 0.0  ;;  %v468_v32 = vmax.f32 %v464_v24, 0.0 }
 0x157   :  { %v1802_v59 = vadd.f32 %v467_v37, %v1687_v45  ;;  %v1805_v25 = vadd.f32 %v465_v33, %v1677_v39  ;;  %v1808_v26 = vadd.f32 %v466_v23, %v1679_v40  ;;  %v1835_v51 = vadd.f32 %v468_v32, %v1689_v46  ;;  %v1554_v37 = vld [vmem:[#allocation3 + $0x1f8] sm:$0xff] }
 0x158   :  { %957 = vmatpush.bf16.msrb.mxu2 %v1554_v37 }
 0x159   :  { %v528_v27 = vpack.c.bf16 %v1808_v26, %v1805_v25  ;;  %v477_v28 = vrot.slane %v1805_v25, 7  ;;  %v479_v29 = vrot.slane %v1808_v26, 7  ;;  %v493_v30 = vrot.slane %v1805_v25, 1 }
 0x15a   :  { %v494_v31 = vrot.slane %v1808_v26, 1  ;;  %v496_v45 = vrot.slane %v1802_v59, 1  ;;  %v481_v52 = vrot.slane %v1802_v59, 7  ;;  %v483_v53 = vrot.slane %v1835_v51, 7 }
 0x15b   :  { %603 = vmatmul.bf16.vlgmr.msra.gmra.mxu3 %v528_v27  ;;  %v478_v39 = vsel %vm92_vm9, %v1698_v50, %v477_v28  ;;  %v480_v40 = vsel %vm92_vm9, %v477_v28, %v479_v29  ;;  %v498_v54 = vrot.slane %v1835_v51, 1  ;;  %v529_v46 = vpack.c.bf16 %v1835_v51, %v1802_v59 }
 0x15c   :  { %v489_v34 = vsel %vm83_vm12, %v1805_v25, %v478_v39  ;;  %v490_v35 = vsel %vm84_vm14, %v1808_v26, %v480_v40  ;;  %v495_v38 = vsel %vm130_vm10, %v493_v30, %v494_v31  ;;  %v497_v41 = vsel %vm130_vm10, %v494_v31, %v496_v45  ;;  %v1546_v39 = vld [vmem:[#allocation3 + $0x1b8] sm:$0xff]  ;;  %v1553_v40 = vld [vmem:[#allocation3 + $0x1f0] sm:$0xff] }
 0x15d   :  { %v509_v42 = vpack.c.bf16 %v490_v35, %v489_v34  ;;  %v505_v43 = vsel %vm126_vm11, %v1805_v25, %v495_v38  ;;  %v506_v44 = vsel %vm127_vm13, %v1808_v26, %v497_v41  ;;  %v482_v55 = vsel %vm92_vm9, %v479_v29, %v481_v52  ;;  %v1562_v34 = vld [vmem:[#allocation3 + $0x238] sm:$0xff]  ;;  %1024 = vmatpush.bf16.msrb.mxu3 %v1546_v39 }
 0x15e   :  { %v681_v47 = vpack.c.bf16 %v506_v44, %v505_v43  ;;  %v484_v56 = vsel %vm92_vm9, %v481_v52, %v483_v53  ;;  %v499_v57 = vsel %vm130_vm10, %v496_v45, %v498_v54  ;;  %v500_v63 = vsel %vm130_vm10, %v498_v54, %v1733_v5  ;;  %958 = vmatpush.bf16.msrb.mxu2 %v1553_v40  ;;  %v1552_v52 = vld [vmem:[#allocation3 + $0x1e8] sm:$0xff]  ;;  %v1561_v53 = vld [vmem:[#allocation3 + $0x230] sm:$0xff]  ;;  %v1539_v40 = vld [vmem:[#allocation3 + $0x180] sm:$0xff] }
 0x15f   :  { %670 = vmatmul.bf16.vlgmr.msrb.gmra.mxu0 %v509_v42  ;;  %v491_v1 = vsel %vm85_vm1, %v1802_v59, %v482_v55  ;;  %v492_v2 = vsel %vm86_vm2, %v1835_v51, %v484_v56  ;;  %v507_v3 = vsel %vm128_vm15, %v1802_v59, %v499_v57  ;;  %v508_v4 = vsel %vm129_vm0, %v1835_v51, %v500_v63  ;;  %v1544_v63 = vld [vmem:[#allocation3 + $0x1a8] sm:$0xff] }
 0x160   :  { %756 = vmatmul.bf16.vlgmr.msrb.gmra.mxu1 %v681_v47  ;;  %v510_v6 = vpack.c.bf16 %v492_v2, %v491_v1  ;;  %v682_v7 = vpack.c.bf16 %v508_v4, %v507_v3  ;;  %1110 = vmatpush.bf16.msra.mxu0 %v1562_v34  ;;  %v1545_v47 = vld [vmem:[#allocation3 + $0x1b0] sm:$0xff]  ;;  %v1560_v1 = vld [vmem:[#allocation3 + $0x228] sm:$0xff] }
 0x161   :  { %1563 = vmatpush.bf16.msra.mxu1 %v1562_v34  ;;  %1025 = vmatpush.bf16.msrb.mxu3 %v1545_v47  ;;  %v1555_v34 = vld [vmem:[#allocation3 + $0x200] sm:$0xff] }
 0x162   :  { %959 = vmatpush.bf16.msrb.mxu2 %v1552_v52  ;;  %v817_v52 = vperm.slane %v1788_v60, 1 }
 0x164   :  { %1111 = vmatpush.bf16.msra.mxu0 %v1561_v53 }
 0x165   :  { %1564 = vmatpush.bf16.msra.mxu1 %v1561_v53  ;;  %1026 = vmatpush.bf16.msrb.mxu3 %v1544_v63  ;;  %v822_v63 = vperm.slane %v1793_v0, 1 }
 0x168   :  { %1112 = vmatpush.bf16.msra.mxu0 %v1560_v1 }
 0x169   :  { %1565 = vmatpush.bf16.msra.mxu1 %v1560_v1 }
 0x16b   :  { %608 = vmatmul.bf16.gmra.mxu3 %v529_v46  ;;  %v1551_v46 = vld [vmem:[#allocation3 + $0x1e0] sm:$0xff] }
 0x16c   :  { %960 = vmatpush.bf16.msrb.mxu2 %v1551_v46 }
 0x16f   :  { %675 = vmatmul.bf16.gmra.mxu0 %v510_v6 }
 0x170   :  { %761 = vmatmul.bf16.gmra.mxu1 %v682_v7  ;;  %v1543_v7 = vld [vmem:[#allocation3 + $0x1a0] sm:$0xff] }
 0x171   :  { %1027 = vmatpush.bf16.msrb.mxu3 %v1543_v7 }
 0x1dc   :  { %v671_v8 = vpop.f32.mrf.mxu0 }
 0x1dd   :  { %v757_v12 = vpop.f32.mrf.mxu1 }
 0x1de   :  { %v604_v13 = vpop.f32.mrf.mxu3 }
 0x1df   :  { %v672_v21 = vadd.f32 %v671_v8, %v604_v13  ;;  %v1550_v8 = vld [vmem:[#allocation3 + $0x1d8] sm:$0xff] }
 0x1e0   :  { %961 = vmatpush.bf16.msrb.mxu2 %v1550_v8 }
 0x1e1   :  { %v1861_v33 = vadd.f32 %v757_v12, %v672_v21  ;;  %v1559_v12 = vld [vmem:[#allocation3 + $0x220] sm:$0xff] }
 0x1e2   :  { %1113 = vmatpush.bf16.msra.mxu0 %v1559_v12  ;;  %1566 = vmatpush.bf16.msra.mxu1 %v1559_v12 }
 0x1e3   :  { %v781_v29 = vmul.f32 %v1861_v33, %v1861_v33 }
 0x1e4   :  { %v673_v14 = vpop.f32.mrf.mxu0 }
 0x1e5   :  { %v759_v15 = vpop.f32.mrf.mxu1 }
 0x1e6   :  { %v606_v16 = vpop.f32.mrf.mxu3 }
 0x1e7   :  { %v674_v18 = vadd.f32 %v673_v14, %v606_v16 }
 0x1e9   :  { %v1859_v22 = vadd.f32 %v759_v15, %v674_v18  ;;  %v1549_v18 = vld [vmem:[#allocation3 + $0x1d0] sm:$0xff] }
 0x1ea   :  { %962 = vmatpush.bf16.msrb.mxu2 %v1549_v18 }
 0x1eb   :  { %v782_v24 = vmul.f32 %v1859_v22, %v1859_v22  ;;  %v771_v30 = vadd.f32 %v1859_v22, %v1861_v33 }
 0x1ec   :  { %v676_v17 = vpop.f32.mrf.mxu0 }
 0x1ed   :  { %v762_v19 = vpop.f32.mrf.mxu1  ;;  %v785_v35 = vadd.f32 %v782_v24, %v781_v29  ;;  %v1541_v24 = vld [vmem:[#allocation3 + $0x190] sm:$0xff] }
 0x1ee   :  { %v609_v20 = vpop.f32.mrf.mxu3 }
 0x1ef   :  { %v677_v36 = vadd.f32 %v676_v17, %v609_v20  ;;  %v1542_v17 = vld [vmem:[#allocation3 + $0x198] sm:$0xff] }
 0x1f0   :  { %1028 = vmatpush.bf16.msrb.mxu3 %v1542_v17 }
 0x1f1   :  { %v1863_v23 = vadd.f32 %v762_v19, %v677_v36  ;;  %v1558_v19 = vld [vmem:[#allocation3 + $0x218] sm:$0xff] }
 0x1f2   :  { %1114 = vmatpush.bf16.msra.mxu0 %v1558_v19  ;;  %1567 = vmatpush.bf16.msra.mxu1 %v1558_v19 }
 0x1f3   :  { %v783_v31 = vmul.f32 %v1863_v23, %v1863_v23  ;;  %v772_v38 = vadd.f32 %v771_v30, %v1863_v23  ;;  %v1540_v30 = vld [vmem:[#allocation3 + $0x188] sm:$0xff] }
 0x1f4   :  { %v678_v27 = vpop.f32.mrf.mxu0  ;;  %1029 = vmatpush.bf16.msrb.mxu3 %v1541_v24 }
 0x1f5   :  { %v764_v32 = vpop.f32.mrf.mxu1  ;;  %v786_v42 = vadd.f32 %v785_v35, %v783_v31  ;;  %v1547_v31 = vld [vmem:[#allocation3 + $0x1c0] sm:$0xff] }
 0x1f6   :  { %v611_v28 = vpop.f32.mrf.mxu3 }
 0x1f7   :  { %v679_v45 = vadd.f32 %v678_v27, %v611_v28  ;;  %v1548_v27 = vld [vmem:[#allocation3 + $0x1c8] sm:$0xff]  ;;  %v1557_v28 = vld [vmem:[#allocation3 + $0x210] sm:$0xff] }
 0x1f8   :  { %963 = vmatpush.bf16.msrb.mxu2 %v1548_v27  ;;  %1115 = vmatpush.bf16.msra.mxu0 %v1557_v28 }
 0x1f9   :  { %v1874_v41 = vadd.f32 %v764_v32, %v679_v45  ;;  %1568 = vmatpush.bf16.msra.mxu1 %v1557_v28  ;;  %v1556_v32 = vld [vmem:[#allocation3 + $0x208] sm:$0xff]  ;;  %1030 = vmatpush.bf16.msrb.mxu3 %v1540_v30 }
 0x1fb   :  { %v773_v43 = vadd.f32 %v772_v38, %v1874_v41  ;;  %v784_v44 = vmul.f32 %v1874_v41, %v1874_v41 }
 0x1fc   :  { %964 = vmatpush.bf16.msrb.mxu2 %v1547_v31  ;;  %1116 = vmatpush.bf16.msra.mxu0 %v1556_v32 }
 0x1fd   :  { %v774_v54 = vrot.slane %v773_v43, 4  ;;  %v787_v55 = vadd.f32 %v786_v42, %v784_v44  ;;  %1569 = vmatpush.bf16.msra.mxu1 %v1556_v32  ;;  %1031 = vmatpush.bf16.msrb.mxu3 %v1539_v40 }
 0x1ff   :  { %v775_v56 = vadd.f32 %v774_v54, %v773_v43  ;;  %v788_v57 = vrot.slane %v787_v55, 4 }
 0x200   :  { %1117 = vmatpush.bf16.msra.mxu0 %v1555_v34 }
 0x201   :  { %v776_v2 = vrot.slane %v775_v56, 2  ;;  %v789_v3 = vadd.f32 %v788_v57, %v787_v55  ;;  %1570 = vmatpush.bf16.msra.mxu1 %v1555_v34 }
 0x203   :  { %v777_v4 = vadd.f32 %v776_v2, %v775_v56  ;;  %v790_v6 = vrot.slane %v789_v3, 2 }
 0x205   :  { %v778_v13 = vrot.slane %v777_v4, 1  ;;  %v791_v14 = vadd.f32 %v790_v6, %v789_v3 }
 0x207   :  { %v779_v15 = vadd.f32 %v778_v13, %v777_v4  ;;  %v792_v16 = vrot.slane %v791_v14, 1 }
 0x209   :  { %v780_v20 = vmul.f32 0.03125, %v779_v15  ;;  %v793_v21 = vadd.f32 %v792_v16, %v791_v14 }
 0x20b   :  { %v794_v36 = vmul.f32 0.03125, %v793_v21  ;;  %v795_v37 = vmul.f32 %v780_v20, %v780_v20  ;;  %v798_v53 = vsub.f32 %v1861_v33, %v780_v20  ;;  %v799_v54 = vsub.f32 %v1859_v22, %v780_v20 }
 0x20c   :  { %v800_v55 = vsub.f32 %v1863_v23, %v780_v20  ;;  %v801_v56 = vsub.f32 %v1874_v41, %v780_v20 }
 0x20d   :  { %v796_v29 = vsub.f32 %v794_v36, %v795_v37 }
 0x20f   :  { %v797_v45 = vmax.f32 %v796_v29, 0.0 }
 0x211   :  { %v802_v39 = vadd.f32 1e-05, %v797_v45 }
 0x213   :  { %1581 = vrsqrt.f32 %v802_v39  ;;  %vm809_vm7 = vweird.f32 %v802_v39 }
 0x219   :  { %v1582_v35 = vpop.eup %1581 }
 0x21a   :  { %v804_v38 = vmul.f32 %v1582_v35, %v802_v39  ;;  %vm810_vm6 = vweird.f32 %v1582_v35 }
 0x21b   :  { %vm811_vm8 = vmor %vm809_vm7, %vm810_vm6 }
 0x21c   :  { %v805_v42 = vmul.f32 %v1582_v35, %v804_v38 }
 0x21e   :  { %v806_v43 = vmul.f32 0.5, %v805_v42 }
 0x220   :  { %v807_v44 = vsub.f32 1.5, %v806_v43 }
 0x222   :  { %v808_v47 = vmul.f32 %v1582_v35, %v807_v44 }
 0x224   :  { %v812_v57 = vsel %vm811_vm8, %v1582_v35, %v808_v47 }
 0x225   :  { %v813_v46 = vmul.f32 %v812_v57, %v798_v53  ;;  %v814_v1 = vmul.f32 %v812_v57, %v799_v54  ;;  %v815_v2 = vmul.f32 %v812_v57, %v800_v55  ;;  %v816_v3 = vmul.f32 %v812_v57, %v801_v56 }
 0x227   :  { %v818_v4 = vmul.f32 %v817_v52, %v813_v46  ;;  %v819_v6 = vmul.f32 %v817_v52, %v814_v1  ;;  %v820_v7 = vmul.f32 %v817_v52, %v815_v2  ;;  %v821_v8 = vmul.f32 %v817_v52, %v816_v3 }
 0x229   :  { %v825_v12 = vadd.f32 %v822_v63, %v820_v7  ;;  %v826_v33 = vadd.f32 %v822_v63, %v821_v8  ;;  %v823_v13 = vadd.f32 %v822_v63, %v818_v4  ;;  %v824_v22 = vadd.f32 %v822_v63, %v819_v6 }
 0x22b   :  { %v829_v14 = vmax.f32 %v825_v12, 0.0  ;;  %v830_v23 = vmax.f32 %v826_v33, 0.0  ;;  %v827_v15 = vmax.f32 %v823_v13, 0.0  ;;  %v828_v41 = vmax.f32 %v824_v22, 0.0 }
 0x22d   :  { %v833_v16 = vadd.f32 %v829_v14, %v1802_v59  ;;  %v834_v17 = vadd.f32 %v830_v23, %v1835_v51  ;;  %v831_v18 = vadd.f32 %v827_v15, %v1805_v25  ;;  %v832_v19 = vadd.f32 %v828_v41, %v1808_v26 }
 0x22f   :  { %v890_v20 = vpack.c.bf16 %v832_v19, %v831_v18  ;;  %v839_v21 = vrot.slane %v831_v18, 7  ;;  %v841_v36 = vrot.slane %v832_v19, 7  ;;  %v855_v37 = vrot.slane %v831_v18, 1 }
 0x230   :  { %v856_v24 = vrot.slane %v832_v19, 1  ;;  %v858_v27 = vrot.slane %v833_v16, 1  ;;  %v860_v28 = vrot.slane %v834_v17, 1  ;;  %v843_v48 = vrot.slane %v833_v16, 7 }
 0x231   :  { %965 = vmatmul.bf16.vlgmr.msrb.gmra.mxu2 %v890_v20  ;;  %v840_v29 = vsel %vm92_vm9, %v1698_v50, %v839_v21  ;;  %v842_v30 = vsel %vm92_vm9, %v839_v21, %v841_v36  ;;  %v845_v35 = vrot.slane %v834_v17, 7  ;;  %v891_v42 = vpack.c.bf16 %v834_v17, %v833_v16 }
 0x232   :  { %v851_v59 = vsel %vm83_vm12, %v831_v18, %v840_v29  ;;  %v852_v25 = vsel %vm84_vm14, %v832_v19, %v842_v30  ;;  %v857_v26 = vsel %vm130_vm10, %v855_v37, %v856_v24  ;;  %v859_v51 = vsel %vm130_vm10, %v856_v24, %v858_v27 }
 0x233   :  { %v871_v31 = vpack.c.bf16 %v852_v25, %v851_v59  ;;  %v867_v45 = vsel %vm126_vm11, %v831_v18, %v857_v26  ;;  %v868_v32 = vsel %vm127_vm13, %v832_v19, %v859_v51  ;;  %v861_v50 = vsel %vm130_vm10, %v858_v27, %v860_v28 }
 0x234   :  { %v1043_v39 = vpack.c.bf16 %v868_v32, %v867_v45  ;;  %v862_v49 = vsel %vm130_vm10, %v860_v28, %v1733_v5  ;;  %v869_v62 = vsel %vm128_vm15, %v833_v16, %v861_v50  ;;  %v844_v61 = vsel %vm92_vm9, %v841_v36, %v843_v48 }
 0x235   :  { %1032 = vmatmul.bf16.vlgmr.msrb.gmra.mxu3 %v871_v31  ;;  %v870_v40 = vsel %vm129_vm0, %v834_v17, %v862_v49  ;;  %v846_v38 = vsel %vm92_vm9, %v843_v48, %v845_v35  ;;  %v853_v5 = vsel %vm85_vm1, %v833_v16, %v844_v61  ;;  %v1179_v48 = vperm.slane %v1788_v60, 2 }
 0x236   :  { %1118 = vmatmul.bf16.vlgmr.msra.gmra.mxu0 %v1043_v39  ;;  %v1044_v34 = vpack.c.bf16 %v870_v40, %v869_v62  ;;  %v854_v58 = vsel %vm86_vm2, %v834_v17, %v846_v38  ;;  %vm1193_vm12 = vcmask 64512  }
 0x237   :  { %v872_v43 = vpack.c.bf16 %v854_v58, %v853_v5  ;;  %v1184_v58 = vperm.slane %v1793_v0, 2 }
 0x238   :  { %1123 = vmatmul.bf16.vlgmr.msra.gmra.mxu1 %v1044_v34 }
 0x241   :  { %970 = vmatmul.bf16.gmra.mxu2 %v891_v42 }
 0x245   :  { %1037 = vmatmul.bf16.gmra.mxu3 %v872_v43 }
 0x2b3   :  { %v1119_v52 = vpop.f32.mrf.mxu0 }
 0x2b4   :  { %v966_v9 = vpop.f32.mrf.mxu2 }
 0x2b5   :  { %v1124_v56 = vpop.f32.mrf.mxu1 }
 0x2b8   :  { %v1033_v44 = vpop.f32.mrf.mxu3 }
 0x2b9   :  { %v1034_v63 = vadd.f32 %v1033_v44, %v966_v9 }
 0x2bb   :  { %v1121_v1 = vpop.f32.mrf.mxu0  ;;  %v1129_v2 = vadd.f32 %v1119_v52, %v1034_v63 }
 0x2bc   :  { %v968_v47 = vpop.f32.mrf.mxu2 }
 0x2bd   :  { %v1143_v7 = vmul.f32 %v1129_v2, %v1129_v2  ;;  %v1126_v13 = vpop.f32.mrf.mxu1 }
 0x2c0   :  { %v1035_v53 = vpop.f32.mrf.mxu3 }
 0x2c1   :  { %v1036_v55 = vadd.f32 %v1035_v53, %v968_v47 }
 0x2c3   :  { %v1130_v10 = vadd.f32 %v1121_v1, %v1036_v55 }
 0x2c4   :  { %v971_v54 = vpop.f32.mrf.mxu2 }
 0x2c5   :  { %v1144_v11 = vmul.f32 %v1130_v10, %v1130_v10  ;;  %v1133_v8 = vadd.f32 %v1130_v10, %v1129_v2 }
 0x2c7   :  { %v1147_v22 = vadd.f32 %v1144_v11, %v1143_v7 }
 0x2c8   :  { %v1038_v57 = vpop.f32.mrf.mxu3 }
 0x2c9   :  { %v1039_v46 = vadd.f32 %v1038_v57, %v971_v54 }
 0x2cb   :  { %v1131_v3 = vadd.f32 %v1124_v56, %v1039_v46 }
 0x2cc   :  { %v973_v4 = vpop.f32.mrf.mxu2 }
 0x2cd   :  { %v1145_v12 = vmul.f32 %v1131_v3, %v1131_v3  ;;  %v1134_v14 = vadd.f32 %v1133_v8, %v1131_v3 }
 0x2cf   :  { %v1148_v15 = vadd.f32 %v1147_v22, %v1145_v12 }
 0x2d0   :  { %v1040_v6 = vpop.f32.mrf.mxu3 }
 0x2d1   :  { %v1041_v33 = vadd.f32 %v1040_v6, %v973_v4 }
 0x2d3   :  { %v1132_v23 = vadd.f32 %v1126_v13, %v1041_v33 }
 0x2d5   :  { %v1135_v41 = vadd.f32 %v1134_v14, %v1132_v23  ;;  %v1146_v16 = vmul.f32 %v1132_v23, %v1132_v23 }
 0x2d7   :  { %v1136_v17 = vrot.slane %v1135_v41, 4  ;;  %v1149_v18 = vadd.f32 %v1148_v15, %v1146_v16 }
 0x2d9   :  { %v1137_v19 = vadd.f32 %v1136_v17, %v1135_v41  ;;  %v1150_v20 = vrot.slane %v1149_v18, 4 }
 0x2db   :  { %v1138_v21 = vrot.slane %v1137_v19, 2  ;;  %v1151_v36 = vadd.f32 %v1150_v20, %v1149_v18 }
 0x2dd   :  { %v1139_v37 = vadd.f32 %v1138_v21, %v1137_v19  ;;  %v1152_v24 = vrot.slane %v1151_v36, 2 }
 0x2df   :  { %v1140_v27 = vrot.slane %v1139_v37, 1  ;;  %v1153_v28 = vadd.f32 %v1152_v24, %v1151_v36 }
 0x2e1   :  { %v1141_v29 = vadd.f32 %v1140_v27, %v1139_v37  ;;  %v1154_v30 = vrot.slane %v1153_v28, 1 }
 0x2e3   :  { %v1142_v59 = vmul.f32 0.03125, %v1141_v29  ;;  %v1155_v25 = vadd.f32 %v1154_v30, %v1153_v28 }
 0x2e5   :  { %v1156_v26 = vmul.f32 0.03125, %v1155_v25  ;;  %v1157_v51 = vmul.f32 %v1142_v59, %v1142_v59  ;;  %v1160_v35 = vsub.f32 %v1129_v2, %v1142_v59  ;;  %v1161_v61 = vsub.f32 %v1130_v10, %v1142_v59 }
 0x2e6   :  { %v1162_v38 = vsub.f32 %v1131_v3, %v1142_v59  ;;  %v1163_v42 = vsub.f32 %v1132_v23, %v1142_v59 }
 0x2e7   :  { %v1158_v31 = vsub.f32 %v1156_v26, %v1157_v51 }
 0x2e9   :  { %v1159_v45 = vmax.f32 %v1158_v31, 0.0 }
 0x2eb   :  { %v1164_v32 = vadd.f32 1e-05, %v1159_v45 }
 0x2ed   :  { %1583 = vrsqrt.f32 %v1164_v32  ;;  %vm1171_vm10 = vweird.f32 %v1164_v32 }
 0x2f3   :  { %v1584_v50 = vpop.eup %1583 }
 0x2f4   :  { %v1166_v39 = vmul.f32 %v1584_v50, %v1164_v32  ;;  %vm1172_vm9 = vweird.f32 %v1584_v50 }
 0x2f5   :  { %vm1173_vm11 = vmor %vm1171_vm10, %vm1172_vm9 }
 0x2f6   :  { %v1167_v49 = vmul.f32 %v1584_v50, %v1166_v39 }
 0x2f8   :  { %v1168_v62 = vmul.f32 0.5, %v1167_v49 }
 0x2fa   :  { %v1169_v40 = vsub.f32 1.5, %v1168_v62 }
 0x2fc   :  { %v1170_v34 = vmul.f32 %v1584_v50, %v1169_v40 }
 0x2fe   :  { %v1174_v5 = vsel %vm1173_vm11, %v1584_v50, %v1170_v34 }
 0x2ff   :  { %v1175_v43 = vmul.f32 %v1174_v5, %v1160_v35  ;;  %v1176_v9 = vmul.f32 %v1174_v5, %v1161_v61  ;;  %v1177_v44 = vmul.f32 %v1174_v5, %v1162_v38  ;;  %v1178_v47 = vmul.f32 %v1174_v5, %v1163_v42 }
 0x301   :  { %v1180_v52 = vmul.f32 %v1179_v48, %v1175_v43  ;;  %v1181_v53 = vmul.f32 %v1179_v48, %v1176_v9  ;;  %v1182_v54 = vmul.f32 %v1179_v48, %v1177_v44  ;;  %v1183_v55 = vmul.f32 %v1179_v48, %v1178_v47 }
 0x303   :  { %v1185_v56 = vadd.f32 %v1184_v58, %v1180_v52  ;;  %v1186_v57 = vadd.f32 %v1184_v58, %v1181_v53  ;;  %v1187_v63 = vadd.f32 %v1184_v58, %v1182_v54  ;;  %v1188_v60 = vadd.f32 %v1184_v58, %v1183_v55 }
 0x305   :  { %v1189_v46 = vmax.f32 %v1185_v56, 0.0  ;;  %v1190_v1 = vmax.f32 %v1186_v57, 0.0  ;;  %v1191_v10 = vmax.f32 %v1187_v63, 0.0  ;;  %v1192_v2 = vmax.f32 %v1188_v60, 0.0 }
 0x307   :  { %1194 = vst.msk [vmem:[%s1934_s5] sm:$0xff] %vm1193_vm12, %v1189_v46 }
 0x308   :  { %1195 = vst.msk [vmem:[%s1934_s5 + $0x8] sm:$0xff] %vm1193_vm12, %v1190_v1 }
 0x309   :  { %1196 = vst.msk [vmem:[%s1934_s5 + $0x10] sm:$0xff] %vm1193_vm12, %v1191_v10 }
 0x30a   :  { %1197 = vst.msk [vmem:[%s1934_s5 + $0x18] sm:$0xff] %vm1193_vm12, %v1192_v2 }
 0x30b   :  { %1202 = vsyncpa [#allocation4], 1 }

</bundles_post_ra>
